<compile_context>
chip_gen: v5e
topology: v5e:2x2
jax: 0.10.0
libtpu: 0.0.40
codegen_flags: <defaults>
</compile_context>

<pallas_src>
import numpy as np
import jax
import jax.numpy as jnp
from jax.experimental import pallas as pl
from jax.experimental.pallas import tpu as pltpu

NUM_KP = 17                 # num_bodypoints
KP_DIM = NUM_KP * 3         # interleaved x,y pairs followed by visibilities (=51)
MAX_Q = 8                   # max_queries (small demo size)
AUX_W = 9                   # cx, cy, bw, bh, max_size, left_pad, top_pad, img_w, img_h
TILE_MAX = 512              # row tile cap (multiple of 8); tiny VMEM, good HBM roofline


def _round_up(x, m):
    return ((x + m - 1) // m) * m


def _postproc_kernel(kp_ref, aux_ref, out_ref):
    """Keypoint affine transform + clip on one row tile, interleaved x/y lanes.

    kp_ref  : VMEM f32 [T, L]  interleaved bbox-normalized keypoints (even lane = x, odd = y)
    aux_ref : VMEM f32 [T, 9]  per-row [cx, cy, bw, bh, max_size, left_pad, top_pad, img_w, img_h]
    out_ref : VMEM f32 [T, L]  adjusted interleaved keypoints (image coordinates)
    """
    aux = aux_ref[...]
    cx, cy = aux[:, 0:1], aux[:, 1:2]
    bw, bh = aux[:, 2:3], aux[:, 3:4]
    max_f = aux[:, 4:5]
    lp_f, tp_f = aux[:, 5:6], aux[:, 6:7]
    w_f, h_f = aux[:, 7:8], aux[:, 8:9]

    # cxcywh -> xyxy in padded-square pixels, remove letterbox pad, clamp to image.
    x1 = jnp.clip((cx - 0.5 * bw) * max_f - lp_f, 0.0, w_f)
    y1 = jnp.clip((cy - 0.5 * bh) * max_f - tp_f, 0.0, h_f)
    x2 = jnp.clip((cx + 0.5 * bw) * max_f - lp_f, 0.0, w_f)
    y2 = jnp.clip((cy + 0.5 * bh) * max_f - tp_f, 0.0, h_f)
    box_w = x2 - x1            # (T, 1)
    box_h = y2 - y1            # (T, 1)

    # Lane-parity select: even lanes carry x, odd lanes carry y. Extra selects
    # ride in idle VALU slots — this kernel is HBM/DMA-bound, not VPU-bound.
    t, lanes = out_ref.shape
    is_x = (jax.lax.broadcasted_iota(jnp.int32, (t, lanes), 1) & 1) == 0
    scale = jnp.where(is_x, box_w, box_h)
    offset = jnp.where(is_x, x1, y1)
    limit = jnp.where(is_x, w_f, h_f)

    # Single FMA + clip over the interleaved data.
    out_ref[...] = jnp.clip(kp_ref[...] * scale + offset, 0.0, limit)


def run_postprocess_kernel(kp, aux, tile):
    """kp: f32[N_pad, L]; aux: f32[N_pad, 9] -> f32[N_pad, L] adjusted (interleaved)."""
    n_pad, kpw = kp.shape
    auxw = aux.shape[1]
    return pl.pallas_call(
        _postproc_kernel,
        out_shape=jax.ShapeDtypeStruct((n_pad, kpw), jnp.float32),
        grid=(n_pad // tile,),
        in_specs=[
            pl.BlockSpec((tile, kpw), lambda i: (i, 0)),
            pl.BlockSpec((tile, auxw), lambda i: (i, 0)),
        ],
        out_specs=pl.BlockSpec((tile, kpw), lambda i: (i, 0)),
        compiler_params=pltpu.CompilerParams(dimension_semantics=("parallel",)),
    )(kp, aux)


@jax.jit
def _device_pipeline(out_kp, pmask, boxes_padded, sizes):
    """All device-side work in one dispatch.

    out_kp       : f32[B, Q, 3K]  bbox-normalized keypoints (interleaved xy then vis)
    pmask        : bool[B, Q]     True = padded/invalid query
    boxes_padded : f32[B, Q, 4]   row q pairs with the q-th valid query (cxcywh, 0-1)
    sizes        : i32[B, 2]      (img_h, img_w)
    returns      : (f32[B, Q, 3K] adjusted keypoints valid-first, i32[B] valid counts)
    """
    B, Q, D = out_kp.shape
    K = D // 3
    KXY = 2 * K

    valid_counts = jnp.sum(~pmask, axis=1).astype(jnp.int32)

    # Ragged gather on device: stable sort valid (mask==False) queries to the front.
    order = jnp.argsort(pmask.astype(jnp.int32), axis=1, stable=True)          # [B, Q]
    gather_idx = jnp.broadcast_to(order[:, :, None], (B, Q, D))
    kp_sorted = jnp.take_along_axis(out_kp, gather_idx, axis=1)                # [B, Q, D]

    kp_xy = kp_sorted[:, :, :KXY]       # interleaved x,y — contiguous slice, no lane gather
    vis = kp_sorted[:, :, KXY:]         # visibilities pass through untouched

    # Per-image geometry scalars (integer math matches the reference exactly).
    h = sizes[:, 0]
    w = sizes[:, 1]
    max_size = jnp.maximum(h, w)
    left_pad = (max_size - w) // 2
    top_pad = (max_size - h) // 2
    geom = jnp.stack([max_size, left_pad, top_pad, w, h], axis=-1).astype(jnp.float32)  # [B, 5]
    geom_rows = jnp.broadcast_to(geom[:, None, :], (B, Q, 5))
    aux = jnp.concatenate([boxes_padded.astype(jnp.float32), geom_rows], axis=-1)       # [B, Q, 9]

    # Flatten to rows; row-tile the grid (tile is a multiple of 8, capped at TILE_MAX).
    N = B * Q
    tile = min(_round_up(max(N, 8), 8), TILE_MAX)
    n_pad = _round_up(N, tile)
    kp_lanes = _round_up(KXY, 64)       # 34 real lanes -> 64-wide slab

    kp_flat = jnp.pad(kp_xy.reshape(N, KXY).astype(jnp.float32),
                      ((0, n_pad - N), (0, kp_lanes - KXY)))
    aux_flat = jnp.pad(aux.reshape(N, AUX_W), ((0, n_pad - N), (0, 0)))

    out = run_postprocess_kernel(kp_flat, aux_flat, tile)                      # [n_pad, kp_lanes]

    adj_xy = out[:N, :KXY].reshape(B, Q, KXY)
    adjusted = jnp.concatenate([adj_xy, vis], axis=-1)                         # [B, Q, D]
    return adjusted, valid_counts


def keypoint_postprocessor(outputs, targets):
    """JAX/Pallas equivalent of KeypointPostProcessor.forward."""
    out_kp = jnp.asarray(outputs['pred_keypoints'], jnp.float32)   # [B, Q, 3K]
    pmask = jnp.asarray(outputs['padding_mask'])                   # [B, Q] bool
    B, Q, D = out_kp.shape
    assert D % 3 == 0, "keypoint dim must be 3 * num_keypoints"

    # Host-side box padding: one device transfer, no per-target device ops.
    boxes_np = np.zeros((B, Q, 4), np.float32)
    n_boxes = np.zeros((B,), np.int64)
    for i, t in enumerate(targets):
        b = np.asarray(t['boxes'], np.float32).reshape(-1, 4)
        n = min(b.shape[0], Q)
        boxes_np[i, :n] = b[:n]
        n_boxes[i] = b.shape[0]
    sizes_np = np.stack(
        [np.asarray(t['orig_size'], np.int64) for t in targets]).astype(np.int32)  # [B, 2]

    adjusted, valid_counts = _device_pipeline(out_kp, pmask, boxes_np, sizes_np)
    adjusted = np.asarray(jax.block_until_ready(adjusted))
    valid_counts = np.asarray(valid_counts)

    results = []
    # TODO(synk): per-image ragged slicing (data-dependent shapes) stays on host.
    for i in range(B):
        n = int(valid_counts[i])
        if int(n_boxes[i]) < n:
            raise ValueError(
                f"targets[{i}]['boxes'] has {int(n_boxes[i])} rows but image {i} "
                f"has {n} valid queries")
        results.append({'keypoints': adjusted[i, :n]})
    return results


def _reference(outputs, targets):
    """Pure-numpy port of the PyTorch forward, for correctness checking."""
    out_kp = np.asarray(outputs['pred_keypoints'], np.float32)
    pmask = np.asarray(outputs['padding_mask'], bool)
    results = []
    for i in range(out_kp.shape[0]):
        valid = np.where(~pmask[i])[0]
        if len(valid) == 0:
            results.append(np.zeros((0, out_kp.shape[-1]), np.float32))
            continue
        kps = out_kp[i][valid]
        img_h, img_w = [int(v) for v in np.asarray(targets[i]['orig_size'])]
        boxes = np.asarray(targets[i]['boxes'], np.float32)
        max_size = max(img_h, img_w)
        left_pad = (max_size - img_w) // 2
        top_pad = (max_size - img_h) // 2
        adj = np.zeros_like(kps)
        nk = kps.shape[-1] // 3
        for k in range(len(valid)):
            cx, cy, w, h = boxes[k]
            x1, y1, x2, y2 = cx - 0.5 * w, cy - 0.5 * h, cx + 0.5 * w, cy + 0.5 * h
            x1 = np.clip(x1 * max_size - left_pad, 0, img_w)
            y1 = np.clip(y1 * max_size - top_pad, 0, img_h)
            x2 = np.clip(x2 * max_size - left_pad, 0, img_w)
            y2 = np.clip(y2 * max_size - top_pad, 0, img_h)
            bw, bh = x2 - x1, y2 - y1
            for j in range(nk):
                adj[k, j * 2] = np.clip(kps[k, j * 2] * bw + x1, 0, img_w)
                adj[k, j * 2 + 1] = np.clip(kps[k, j * 2 + 1] * bh + y1, 0, img_h)
            adj[k, nk * 2:] = kps[k, nk * 2:]
        results.append(adj)
    return results


if __name__ == "__main__":
    B = 2
    key = jax.random.PRNGKey(0)
    k_kp, k_box0, k_box1 = jax.random.split(key, 3)

    # Predictions: bbox-normalized keypoints in [0, 1].
    pred_keypoints = jax.random.uniform(k_kp, (B, MAX_Q, KP_DIM), dtype=jnp.float32)

    # Padding mask: image 0 has 5 valid queries (contiguous), image 1 has 3
    # valid queries at non-contiguous positions.
    padding_mask = np.ones((B, MAX_Q), dtype=bool)
    padding_mask[0, :5] = False
    padding_mask[1, [0, 2, 4]] = False
    padding_mask = jnp.asarray(padding_mask)

    def make_boxes(k, n):
        kc, ks = jax.random.split(k)
        centers = jax.random.uniform(kc, (n, 2), minval=0.3, maxval=0.7)
        wh = jax.random.uniform(ks, (n, 2), minval=0.1, maxval=0.4)
        return jnp.concatenate([centers, wh], axis=-1).astype(jnp.float32)

    targets = [
        {
            'boxes': make_boxes(k_box0, 5),
            'orig_size': jnp.asarray([480, 640], dtype=jnp.int32),   # (h, w)
        },
        {
            'boxes': make_boxes(k_box1, 3),
            'orig_size': jnp.asarray([500, 375], dtype=jnp.int32),
        },
    ]
    outputs = {'pred_keypoints': pred_keypoints, 'padding_mask': padding_mask}

    results = keypoint_postprocessor(outputs, targets)
    ref = _reference(outputs, targets)

    assert len(results) == len(ref)
    for r, rr in zip(results, ref):
        got = np.asarray(r['keypoints'])
        assert got.shape == rr.shape, (got.shape, rr.shape)
        np.testing.assert_allclose(got, rr, rtol=1e-5, atol=1e-4)

    print("KERNEL_OK")
</pallas_src>

<mosaic_0001>
module attributes {stable_mosaic.version = 11 : i64} {
  func.func @_postproc_kernel(%arg0: i32, %arg1: memref<16x64xf32, #tpu.memory_space<vmem>>, %arg2: memref<16x9xf32, #tpu.memory_space<vmem>>, %arg3: memref<16x64xf32, #tpu.memory_space<vmem>>) attributes {dimension_semantics = [#tpu.dimension_semantics<parallel>], iteration_bounds = array<i64: 1>, scalar_prefetch = 0 : i64, scratch_operands = 0 : i64, tpu.core_type = #tpu.core_type<tc>, window_params = [{transform_indices = @transform_0, window_bounds = array<i64: 16, 64>}, {transform_indices = @transform_1, window_bounds = array<i64: 16, 9>}, {transform_indices = @transform_2, window_bounds = array<i64: 16, 64>}]} {
    %c0 = arith.constant 0 : index
    %c0_0 = arith.constant 0 : index
    %0 = vector.load %arg2[%c0, %c0_0] : memref<16x9xf32, #tpu.memory_space<vmem>>, vector<16x9xf32>
    %1 = vector.extract_strided_slice %0 {offsets = [0, 0], sizes = [16, 1], strides = [1, 1]} : vector<16x9xf32> to vector<16x1xf32>
    %2 = vector.extract_strided_slice %0 {offsets = [0, 1], sizes = [16, 1], strides = [1, 1]} : vector<16x9xf32> to vector<16x1xf32>
    %3 = vector.extract_strided_slice %0 {offsets = [0, 2], sizes = [16, 1], strides = [1, 1]} : vector<16x9xf32> to vector<16x1xf32>
    %4 = vector.extract_strided_slice %0 {offsets = [0, 3], sizes = [16, 1], strides = [1, 1]} : vector<16x9xf32> to vector<16x1xf32>
    %5 = vector.extract_strided_slice %0 {offsets = [0, 4], sizes = [16, 1], strides = [1, 1]} : vector<16x9xf32> to vector<16x1xf32>
    %6 = vector.extract_strided_slice %0 {offsets = [0, 5], sizes = [16, 1], strides = [1, 1]} : vector<16x9xf32> to vector<16x1xf32>
    %7 = vector.extract_strided_slice %0 {offsets = [0, 6], sizes = [16, 1], strides = [1, 1]} : vector<16x9xf32> to vector<16x1xf32>
    %8 = vector.extract_strided_slice %0 {offsets = [0, 7], sizes = [16, 1], strides = [1, 1]} : vector<16x9xf32> to vector<16x1xf32>
    %9 = vector.extract_strided_slice %0 {offsets = [0, 8], sizes = [16, 1], strides = [1, 1]} : vector<16x9xf32> to vector<16x1xf32>
    %cst = arith.constant 5.000000e-01 : f32
    %10 = vector.broadcast %cst : f32 to vector<16x1xf32>
    %11 = arith.mulf %10, %3 : vector<16x1xf32>
    %12 = arith.subf %1, %11 : vector<16x1xf32>
    %13 = arith.mulf %12, %5 : vector<16x1xf32>
    %14 = arith.subf %13, %6 : vector<16x1xf32>
    %cst_1 = arith.constant 0.000000e+00 : f32
    %15 = vector.broadcast %cst_1 : f32 to vector<16x1xf32>
    %16 = arith.maximumf %15, %14 : vector<16x1xf32>
    %17 = arith.minimumf %8, %16 : vector<16x1xf32>
    %cst_2 = arith.constant 5.000000e-01 : f32
    %18 = vector.broadcast %cst_2 : f32 to vector<16x1xf32>
    %19 = arith.mulf %18, %4 : vector<16x1xf32>
    %20 = arith.subf %2, %19 : vector<16x1xf32>
    %21 = arith.mulf %20, %5 : vector<16x1xf32>
    %22 = arith.subf %21, %7 : vector<16x1xf32>
    %cst_3 = arith.constant 0.000000e+00 : f32
    %23 = vector.broadcast %cst_3 : f32 to vector<16x1xf32>
    %24 = arith.maximumf %23, %22 : vector<16x1xf32>
    %25 = arith.minimumf %9, %24 : vector<16x1xf32>
    %cst_4 = arith.constant 5.000000e-01 : f32
    %26 = vector.broadcast %cst_4 : f32 to vector<16x1xf32>
    %27 = arith.mulf %26, %3 : vector<16x1xf32>
    %28 = arith.addf %1, %27 : vector<16x1xf32>
    %29 = arith.mulf %28, %5 : vector<16x1xf32>
    %30 = arith.subf %29, %6 : vector<16x1xf32>
    %cst_5 = arith.constant 0.000000e+00 : f32
    %31 = vector.broadcast %cst_5 : f32 to vector<16x1xf32>
    %32 = arith.maximumf %31, %30 : vector<16x1xf32>
    %33 = arith.minimumf %8, %32 : vector<16x1xf32>
    %cst_6 = arith.constant 5.000000e-01 : f32
    %34 = vector.broadcast %cst_6 : f32 to vector<16x1xf32>
    %35 = arith.mulf %34, %4 : vector<16x1xf32>
    %36 = arith.addf %2, %35 : vector<16x1xf32>
    %37 = arith.mulf %36, %5 : vector<16x1xf32>
    %38 = arith.subf %37, %7 : vector<16x1xf32>
    %cst_7 = arith.constant 0.000000e+00 : f32
    %39 = vector.broadcast %cst_7 : f32 to vector<16x1xf32>
    %40 = arith.maximumf %39, %38 : vector<16x1xf32>
    %41 = arith.minimumf %9, %40 : vector<16x1xf32>
    %42 = arith.subf %33, %17 : vector<16x1xf32>
    %43 = arith.subf %41, %25 : vector<16x1xf32>
    %44 = tpu.iota {dimensions = array<i32: 1>} : vector<16x64xi32>
    %c1_i32 = arith.constant 1 : i32
    %45 = vector.broadcast %c1_i32 : i32 to vector<16x64xi32>
    %46 = arith.andi %44, %45 : vector<16x64xi32>
    %c0_i32 = arith.constant 0 : i32
    %47 = vector.broadcast %c0_i32 : i32 to vector<16x64xi32>
    %48 = arith.cmpi eq, %46, %47 : vector<16x64xi32>
    %49 = vector.shape_cast %42 : vector<16x1xf32> to vector<16x1xf32>
    %50 = vector.broadcast %49 : vector<16x1xf32> to vector<16x64xf32>
    %51 = vector.shape_cast %43 : vector<16x1xf32> to vector<16x1xf32>
    %52 = vector.broadcast %51 : vector<16x1xf32> to vector<16x64xf32>
    %53 = arith.select %48, %50, %52 : vector<16x64xi1>, vector<16x64xf32>
    %54 = vector.shape_cast %17 : vector<16x1xf32> to vector<16x1xf32>
    %55 = vector.broadcast %54 : vector<16x1xf32> to vector<16x64xf32>
    %56 = vector.shape_cast %25 : vector<16x1xf32> to vector<16x1xf32>
    %57 = vector.broadcast %56 : vector<16x1xf32> to vector<16x64xf32>
    %58 = arith.select %48, %55, %57 : vector<16x64xi1>, vector<16x64xf32>
    %59 = vector.shape_cast %8 : vector<16x1xf32> to vector<16x1xf32>
    %60 = vector.broadcast %59 : vector<16x1xf32> to vector<16x64xf32>
    %61 = vector.shape_cast %9 : vector<16x1xf32> to vector<16x1xf32>
    %62 = vector.broadcast %61 : vector<16x1xf32> to vector<16x64xf32>
    %63 = arith.select %48, %60, %62 : vector<16x64xi1>, vector<16x64xf32>
    %c0_8 = arith.constant 0 : index
    %c0_9 = arith.constant 0 : index
    %64 = vector.load %arg1[%c0_8, %c0_9] : memref<16x64xf32, #tpu.memory_space<vmem>>, vector<16x64xf32>
    %65 = arith.mulf %64, %53 : vector<16x64xf32>
    %66 = arith.addf %65, %58 : vector<16x64xf32>
    %cst_10 = arith.constant 0.000000e+00 : f32
    %67 = vector.broadcast %cst_10 : f32 to vector<16x64xf32>
    %68 = arith.maximumf %67, %66 : vector<16x64xf32>
    %69 = arith.minimumf %63, %68 : vector<16x64xf32>
    %c0_11 = arith.constant 0 : index
    %c0_12 = arith.constant 0 : index
    %70 = vector.load %arg3[%c0_11, %c0_12] : memref<16x64xf32, #tpu.memory_space<vmem>>, vector<16x64xf32>
    tpu.vector_store %arg3[%c0_11, %c0_12], %69 {strides = array<i32>} : memref<16x64xf32, #tpu.memory_space<vmem>>, vector<16x64xf32>,
    return
  }
  func.func @transform_0(%arg0: i32) -> (i32, i32) {
    %c0_i32 = arith.constant 0 : i32
    %c0_i32_0 = arith.constant 0 : i32
    return %arg0, %c0_i32 : i32, i32
  }
  func.func @transform_1(%arg0: i32) -> (i32, i32) {
    %c0_i32 = arith.constant 0 : i32
    %c0_i32_0 = arith.constant 0 : i32
    return %arg0, %c0_i32 : i32, i32
  }
  func.func @transform_2(%arg0: i32) -> (i32, i32) {
    %c0_i32 = arith.constant 0 : i32
    %c0_i32_0 = arith.constant 0 : i32
    return %arg0, %c0_i32 : i32, i32
  }
}

</mosaic_0001>

<bundles_post_ra>
// kernel: _device_pipeline.1
= control target key start
LH: loop header
LB: loop body
LE: loop exit
PB: predicated region body
PF: predicated region fallthrough
CT: control target
= control target key end

     0   :  { %s211_s11 = smov 124   ;;  %s212_s12 = smov 125   ;;  %v216_v40 = vmov 7   ;;  %v217_v41 = vmov 8   ;;  %vm191_vm1 = vcmask 523264   ;;  %s297_s1 = inlined_call_operand.vmem [shape: f32[16,9], index: 1, kind: input, shape index: {}]   ;;  %s298_s0 = inlined_call_operand.vmem [shape: f32[16,64], index: 0, kind: input, shape index: {}]   ;;  %s299_s2 = inlined_call_operand.vmem [shape: f32[16,64], index: 2, kind: output, shape index: {}]  }
   0x1   :  { %v236_v0 = vld [vmem:[%s297_s1] sm:$0xff]  ;;  %s213_s13 = smov 126   ;;  %v244_v2 = vld [vmem:[%s297_s1 + $0x8] sm:$0xff]  ;;  %s214_s16 = smov 123   ;;  %206 = vset.pattern.permute.xlu2 %v216_v40  ;;  %205 = vset.pattern.permute.xlu1 %v216_v40 }
   0x2   :  { %27 = vrot.lane.b32.xlu1 %v236_v0, %s211_s11  ;;  %v13_v1 = vmul.f32 0.5, %v236_v0  ;;  %55 = vrot.lane.b32.xlu2 %v236_v0, %s212_s12  ;;  %v14_v3 = vmul.f32 0.5, %v244_v2  ;;  %s215_s1 = smov 7  }
   0x3   :  { %208 = vset.pattern.permute.xlu0 %v217_v41 }
   0x4   :  { %17 = vrot.lane.b32.xlu0 %v13_v1, %s213_s13  ;;  %v115_v1 = vlaneseq }
   0xa   :  { %29 = vrot.lane.b32.xlu1 %v244_v2, %s211_s11  ;;  %57 = vrot.lane.b32.xlu2 %v244_v2, %s212_s12 }
   0xc   :  { %19 = vrot.lane.b32.xlu0 %v14_v3, %s213_s13 }
  0x12   :  { %37 = vrot.lane.b32.xlu1 %v244_v2, %s214_s16 }
  0x14   :  { %35 = vrot.lane.b32.xlu0 %v236_v0, %s214_s16 }
  0x5c   :  { %v56_v6 = vpop.permute.xlu2 %55 }
  0x64   :  { %v58_v17 = vpop.permute.xlu2 %57 }
  0x74   :  { %v28_v4 = vpop.permute.xlu1 %27 }
  0x76   :  { %v18_v5 = vpop.permute.xlu0 %17 }
  0x77   :  { %v23_v10 = vsub.f32 %v236_v0, %v18_v5  ;;  %v77_v14 = vadd.f32 %v18_v5, %v236_v0 }
  0x79   :  { %v33_v13 = vmul.f32 %v28_v4, %v23_v10  ;;  %v61_v15 = vmul.f32 %v56_v6, %v23_v10  ;;  %v79_v23 = vmul.f32 %v77_v14, %v28_v4  ;;  %v95_v35 = vmul.f32 %v77_v14, %v56_v6 }
  0x7a   :  { %v116_v4 = vand.u32 127, %v115_v1 }
  0x7c   :  { %v30_v7 = vpop.permute.xlu1 %29 }
  0x7e   :  { %v20_v8 = vpop.permute.xlu0 %19 }
  0x7f   :  { %v24_v9 = vsub.f32 %v244_v2, %v20_v8  ;;  %v78_v19 = vadd.f32 %v20_v8, %v244_v2 }
  0x81   :  { %v34_v11 = vmul.f32 %v30_v7, %v24_v9  ;;  %v62_v24 = vmul.f32 %v58_v17, %v24_v9  ;;  %v80_v27 = vmul.f32 %v78_v19, %v30_v7  ;;  %v96_v31 = vmul.f32 %v78_v19, %v58_v17 }
  0x82   :  { %v117_v7 = vand.u32 1, %v116_v4 }
  0x84   :  { %v38_v12 = vpop.permute.xlu1 %37  ;;  %vm270_vm0 = vcmp.eq.s32.totalorder %v117_v7, 0 }
  0x85   :  { %v42_v16 = vsub.f32 %v34_v11, %v38_v12  ;;  %v82_v29 = vsub.f32 %v80_v27, %v38_v12  ;;  %v64_v30 = vsub.f32 %v62_v24, %v38_v12  ;;  %v98_v36 = vsub.f32 %v96_v31, %v38_v12 }
  0x86   :  { %v36_v18 = vpop.permute.xlu0 %35 }
  0x87   :  { %v44_v20 = vmax.f32 %v42_v16, 0.0  ;;  %v63_v21 = vsub.f32 %v61_v15, %v36_v18  ;;  %v41_v22 = vsub.f32 %v33_v13, %v36_v18  ;;  %v81_v28 = vsub.f32 %v79_v23, %v36_v18 }
  0x88   :  { %v84_v33 = vmax.f32 %v82_v29, 0.0  ;;  %v66_v34 = vmax.f32 %v64_v30, 0.0  ;;  %v97_v37 = vsub.f32 %v95_v35, %v36_v18  ;;  %v100_v38 = vmax.f32 %v98_v36, 0.0  ;;  %v182_v18 = vld [vmem:[%s298_s0 + $0x8] sm:$0xff] }
  0x89   :  { %49 = vrot.lane.b32.xlu0 %v44_v20, %s215_s1  ;;  %v65_v25 = vmax.f32 %v63_v21, 0.0  ;;  %v43_v26 = vmax.f32 %v41_v22, 0.0  ;;  %v83_v32 = vmax.f32 %v81_v28, 0.0 }
  0x8a   :  { %v99_v39 = vmax.f32 %v97_v37, 0.0 }
  0x8b   :  { %69 = vrot.lane.b32.xlu1 %v65_v25, %s215_s1  ;;  %47 = vrot.lane.b32.xlu2 %v43_v26, %s215_s1 }
  0x91   :  { %87 = vrot.lane.b32.xlu0 %v83_v32, %s215_s1 }
  0x93   :  { %89 = vrot.lane.b32.xlu1 %v84_v33, %s215_s1  ;;  %71 = vrot.lane.b32.xlu2 %v66_v34, %s215_s1 }
  0x99   :  { %105 = vrot.lane.b32.xlu0 %v100_v38, %s215_s1 }
  0x9b   :  { %103 = vrot.lane.b32.xlu2 %v99_v39, %s215_s1  ;;  %164 = vperm.xlu1 %205, %v236_v0  }
  0xe5   :  { %v48_v42 = vpop.permute.xlu2 %47 }
  0xe6   :  { %v53_v43 = vmin.f32 %v236_v0, %v48_v42 }
  0xe8   :  { %143 = vperm.xlu2 %206, %v53_v43  }
  0xed   :  { %v72_v44 = vpop.permute.xlu2 %71 }
  0xee   :  { %v76_v45 = vmin.f32 %v244_v2, %v72_v44 }
  0xf0   :  { %158 = vperm.xlu0 %208, %v76_v45   ;;  %207 = vset.pattern.permute.xlu2 %v217_v41 }
  0xf5   :  { %v104_v46 = vpop.permute.xlu2 %103 }
  0xf6   :  { %v109_v50 = vmin.f32 %v236_v0, %v104_v46 }
  0xfb   :  { %v50_v47 = vpop.permute.xlu0 %49 }
  0xfc   :  { %v54_v48 = vmin.f32 %v244_v2, %v50_v47 }
  0xfd   :  { %v70_v49 = vpop.permute.xlu1 %69 }
  0xfe   :  { %v75_v51 = vmin.f32 %v236_v0, %v70_v49  ;;  %148 = vperm.xlu1 %205, %v54_v48  }
 0x100   :  { %v113_v52 = vsub.f32 %v109_v50, %v75_v51  ;;  %153 = vperm.xlu2 %207, %v75_v51  }
 0x102   :  { %131 = vperm.xlu0 %208, %v113_v52  }
 0x103   :  { %v88_v53 = vpop.permute.xlu0 %87 }
 0x104   :  { %v93_v54 = vmin.f32 %v236_v0, %v88_v53 }
 0x105   :  { %v90_v55 = vpop.permute.xlu1 %89 }
 0x106   :  { %v111_v56 = vsub.f32 %v93_v54, %v53_v43  ;;  %v94_v57 = vmin.f32 %v244_v2, %v90_v55 }
 0x108   :  { %v112_v58 = vsub.f32 %v94_v57, %v54_v48  ;;  %121 = vperm.xlu1 %205, %v111_v56   ;;  %209 = vset.pattern.permute.xlu2 %v216_v40 }
 0x10a   :  { %172 = vperm.xlu0 %208, %v236_v0   ;;  %126 = vperm.xlu2 %209, %v112_v58   ;;  %v181_v0 = vld [vmem:[%s298_s0] sm:$0xff] }
 0x10b   :  { %v106_v59 = vpop.permute.xlu0 %105 }
 0x10c   :  { %v110_v60 = vmin.f32 %v244_v2, %v106_v59 }
 0x10d   :  { %v165_v62 = vpop.permute.xlu1 %164 }
 0x10e   :  { %v114_v61 = vsub.f32 %v110_v60, %v76_v45 }
 0x110   :  { %210 = vset.pattern.permute.xlu1 %v217_v41 }
 0x111   :  { %136 = vperm.xlu1 %210, %v114_v61  }
 0x112   :  { %168 = vperm.xlu2 %209, %v244_v2  }
 0x119   :  { %176 = vperm.xlu1 %210, %v244_v2  }
 0x142   :  { %v144_v3 = vpop.permute.xlu2 %143 }
 0x15a   :  { %v154_v9 = vpop.permute.xlu2 %153 }
 0x15b   :  { %v161_v12 = vsel %vm270_vm0, %v144_v3, %v154_v9 }
 0x162   :  { %v159_v63 = vpop.permute.xlu0 %158 }
 0x164   :  { %v127_v19 = vpop.permute.xlu2 %126 }
 0x16c   :  { %v169_v25 = vpop.permute.xlu2 %168 }
 0x170   :  { %v149_v5 = vpop.permute.xlu1 %148 }
 0x171   :  { %v162_v23 = vsel %vm270_vm0, %v149_v5, %v159_v63 }
 0x174   :  { %v132_v6 = vpop.permute.xlu0 %131 }
 0x17a   :  { %v122_v10 = vpop.permute.xlu1 %121 }
 0x17b   :  { %v139_v2 = vsel %vm270_vm0, %v122_v10, %v132_v6 }
 0x17c   :  { %v183_v11 = vmul.f32 %v181_v0, %v139_v2  ;;  %v173_v14 = vpop.permute.xlu0 %172 }
 0x17d   :  { %v179_v16 = vsel %vm270_vm0, %v165_v62, %v173_v14 }
 0x17e   :  { %v185_v13 = vadd.f32 %v183_v11, %v161_v12 }
 0x180   :  { %v187_v15 = vmax.f32 %v185_v13, 0.0 }
 0x182   :  { %v189_v17 = vmin.f32 %v179_v16, %v187_v15 }
 0x183   :  { %v137_v20 = vpop.permute.xlu1 %136 }
 0x184   :  { %192 = vst.msk [vmem:[%s299_s2] sm:$0xff] %vm191_vm1, %v189_v17  ;;  %v140_v21 = vsel %vm270_vm0, %v127_v19, %v137_v20 }
 0x185   :  { %v184_v22 = vmul.f32 %v182_v18, %v140_v21 }
 0x187   :  { %v186_v24 = vadd.f32 %v184_v22, %v162_v23 }
 0x189   :  { %v188_v27 = vmax.f32 %v186_v24, 0.0 }
 0x18b   :  { %v177_v26 = vpop.permute.xlu1 %176 }
 0x18c   :  { %v180_v28 = vsel %vm270_vm0, %v169_v25, %v177_v26 }
 0x18d   :  { %v190_v29 = vmin.f32 %v180_v28, %v188_v27 }
 0x18f   :  { %193 = vst.msk [vmem:[%s299_s2 + $0x8] sm:$0xff] %vm191_vm1, %v190_v29 }

</bundles_post_ra>
